<compile_context>
chip_gen: v7x
topology: tpu7x:2x2x1
jax: 0.10.0
libtpu: 0.0.40
codegen_flags: <defaults>
</compile_context>

<pallas_src>
import jax
import jax.numpy as jnp
from jax.experimental import pallas as pl
from jax.experimental.pallas import tpu as pltpu

N_STATES = 2
N_HIDDEN = 10
N_ACTIONS = 2
LANES = 128          # lane width of a vreg; batch axis is padded to this
TL_MAX = 1024        # batch lanes per grid step (keeps live rows in vregs)


def _mlp_kernel(w1_ref, b1_ref, w2_ref, b2_ref, x_ref, o_ref):
    # x_ref:  [N_STATES, TL]  VMEM (batch in lanes, features in sublanes)
    # o_ref:  [N_ACTIONS, TL] VMEM
    # w1_ref: [N_HIDDEN*N_STATES] SMEM, flat, w1[j*N_STATES + k]
    # b1_ref: [N_HIDDEN]          SMEM
    # w2_ref: [N_ACTIONS*N_HIDDEN] SMEM, flat, w2[a*N_HIDDEN + j]
    # b2_ref: [N_ACTIONS]          SMEM
    xs = [x_ref[k:k + 1, :] for k in range(N_STATES)]          # N_STATES x [1, TL]
    ys = [b2_ref[a] + jnp.zeros_like(xs[0]) for a in range(N_ACTIONS)]

    # Fused fc1 + ReLU + fc2: only one hidden row live at a time.
    for j in range(N_HIDDEN):
        h = b1_ref[j] + jnp.zeros_like(xs[0])                  # [1, TL]
        for k in range(N_STATES):
            h = h + w1_ref[j * N_STATES + k] * xs[k]           # scalar-splat FMA
        h = jnp.maximum(h, 0.0)                                 # ReLU
        for a in range(N_ACTIONS):
            ys[a] = ys[a] + w2_ref[a * N_HIDDEN + j] * h

    for a in range(N_ACTIONS):
        o_ref[a:a + 1, :] = ys[a].astype(o_ref.dtype)


def _round_up(n, m):
    return (n + m - 1) // m * m


def net_forward(x, w1, b1, w2, b2):
    """x: [B, N_STATES] f32 -> [B, N_ACTIONS] f32.

    Weights are in PyTorch layout (w1 [10,2], b1 [10], w2 [2,10], b2 [2]).
    They are flattened into SMEM scalar tables; activations are transposed to
    a feature-major, lane-dense layout (batch in lanes) for the kernel.
    """
    B = x.shape[0]
    tl = min(TL_MAX, _round_up(B, LANES))       # lanes per grid step
    bp = _round_up(B, tl)                       # padded batch (multiple of tl)

    # Feature-major activations; pad is at most (tl-1) lanes of a 2-row array.
    xt = jnp.pad(x.T.astype(jnp.float32), ((0, 0), (0, bp - B)))   # [N_STATES, bp]

    # Flat f32 scalar tables for SMEM (1-D avoids 2-D SMEM padding blowup).
    w1f = w1.astype(jnp.float32).reshape(-1)    # [20]
    b1f = b1.astype(jnp.float32).reshape(-1)    # [10]
    w2f = w2.astype(jnp.float32).reshape(-1)    # [20]
    b2f = b2.astype(jnp.float32).reshape(-1)    # [2]

    smem = pl.BlockSpec(memory_space=pltpu.MemorySpace.SMEM)
    out = pl.pallas_call(
        _mlp_kernel,
        out_shape=jax.ShapeDtypeStruct((N_ACTIONS, bp), jnp.float32),
        grid=(bp // tl,),
        in_specs=[
            smem, smem, smem, smem,                                # w1,b1,w2,b2
            pl.BlockSpec((N_STATES, tl), lambda i: (0, i)),        # x tile
        ],
        out_specs=pl.BlockSpec((N_ACTIONS, tl), lambda i: (0, i)),
        compiler_params=pltpu.CompilerParams(
            dimension_semantics=("parallel",)),
    )(w1f, b1f, w2f, b2f, xt)

    return out[:, :B].T                                            # [B, N_ACTIONS]


def init_params(key):
    # Mirrors Net.__init__: weights ~ Normal(0, 0.1); biases use PyTorch
    # Linear's default uniform(-1/sqrt(fan_in), 1/sqrt(fan_in)).
    k1, k2, k3, k4 = jax.random.split(key, 4)
    w1 = 0.1 * jax.random.normal(k1, (N_HIDDEN, N_STATES), dtype=jnp.float32)
    b1 = jax.random.uniform(k3, (N_HIDDEN,), jnp.float32,
                            -N_STATES ** -0.5, N_STATES ** -0.5)
    w2 = 0.1 * jax.random.normal(k2, (N_ACTIONS, N_HIDDEN), dtype=jnp.float32)
    b2 = jax.random.uniform(k4, (N_ACTIONS,), jnp.float32,
                            -N_HIDDEN ** -0.5, N_HIDDEN ** -0.5)
    return w1, b1, w2, b2


if __name__ == "__main__":
    key = jax.random.PRNGKey(0)
    kx, kp, kx2, kx3 = jax.random.split(key, 4)
    w1, b1, w2, b2 = init_params(kp)

    def ref_forward(xx):
        return jnp.maximum(xx @ w1.T + b1, 0.0) @ w2.T + b2

    # Small inference-style batch (single 128-lane tile).
    B = 8
    x = jax.random.normal(kx, (B, N_STATES), dtype=jnp.float32)
    out = jax.block_until_ready(net_forward(x, w1, b1, w2, b2))
    assert out.shape == (B, N_ACTIONS)
    assert jnp.allclose(out, ref_forward(x), atol=1e-5, rtol=1e-5)

    # Ragged batch: exercises lane padding.
    B2 = 600
    x2 = jax.random.normal(kx2, (B2, N_STATES), dtype=jnp.float32)
    out2 = jax.block_until_ready(net_forward(x2, w1, b1, w2, b2))
    assert out2.shape == (B2, N_ACTIONS)
    assert jnp.allclose(out2, ref_forward(x2), atol=1e-5, rtol=1e-5)

    # Larger batch: exercises the multi-step parallel grid (3 x 1024-lane tiles).
    B3 = 3000
    x3 = jax.random.normal(kx3, (B3, N_STATES), dtype=jnp.float32)
    out3 = jax.block_until_ready(net_forward(x3, w1, b1, w2, b2))
    assert out3.shape == (B3, N_ACTIONS)
    assert jnp.allclose(out3, ref_forward(x3), atol=1e-5, rtol=1e-5)

    print("KERNEL_OK")
</pallas_src>

<mosaic_0001>
module attributes {stable_mosaic.version = 11 : i64} {
  func.func @_mlp_kernel(%arg0: i32, %arg1: memref<20xf32, #tpu.memory_space<smem>>, %arg2: memref<10xf32, #tpu.memory_space<smem>>, %arg3: memref<20xf32, #tpu.memory_space<smem>>, %arg4: memref<2xf32, #tpu.memory_space<smem>>, %arg5: memref<2x128xf32, #tpu.memory_space<vmem>>, %arg6: memref<2x128xf32, #tpu.memory_space<vmem>>) attributes {dimension_semantics = [#tpu.dimension_semantics<parallel>], iteration_bounds = array<i64: 1>, scalar_prefetch = 0 : i64, scratch_operands = 0 : i64, tpu.core_type = #tpu.core_type<tc>, window_params = [{transform_indices = @transform_0, window_bounds = array<i64: 20>}, {transform_indices = @transform_1, window_bounds = array<i64: 10>}, {transform_indices = @transform_2, window_bounds = array<i64: 20>}, {transform_indices = @transform_3, window_bounds = array<i64: 2>}, {transform_indices = @transform_4, window_bounds = array<i64: 2, 128>}, {transform_indices = @transform_5, window_bounds = array<i64: 2, 128>}]} {
    %c0 = arith.constant 0 : index
    %c0_0 = arith.constant 0 : index
    %0 = vector.load %arg5[%c0, %c0_0] : memref<2x128xf32, #tpu.memory_space<vmem>>, vector<1x128xf32>
    %c1 = arith.constant 1 : index
    %c0_1 = arith.constant 0 : index
    %1 = vector.load %arg5[%c1, %c0_1] : memref<2x128xf32, #tpu.memory_space<vmem>>, vector<1x128xf32>
    %c0_2 = arith.constant 0 : index
    %2 = memref.load %arg4[%c0_2] : memref<2xf32, #tpu.memory_space<smem>>
    %cst = arith.constant 0.000000e+00 : f32
    %3 = vector.broadcast %cst : f32 to vector<1x128xf32>
    %4 = vector.broadcast %2 : f32 to vector<1x128xf32>
    %5 = arith.addf %4, %3 : vector<1x128xf32>
    %c1_3 = arith.constant 1 : index
    %6 = memref.load %arg4[%c1_3] : memref<2xf32, #tpu.memory_space<smem>>
    %cst_4 = arith.constant 0.000000e+00 : f32
    %7 = vector.broadcast %cst_4 : f32 to vector<1x128xf32>
    %8 = vector.broadcast %6 : f32 to vector<1x128xf32>
    %9 = arith.addf %8, %7 : vector<1x128xf32>
    %c0_5 = arith.constant 0 : index
    %10 = memref.load %arg2[%c0_5] : memref<10xf32, #tpu.memory_space<smem>>
    %cst_6 = arith.constant 0.000000e+00 : f32
    %11 = vector.broadcast %cst_6 : f32 to vector<1x128xf32>
    %12 = vector.broadcast %10 : f32 to vector<1x128xf32>
    %13 = arith.addf %12, %11 : vector<1x128xf32>
    %c0_7 = arith.constant 0 : index
    %14 = memref.load %arg1[%c0_7] : memref<20xf32, #tpu.memory_space<smem>>
    %15 = vector.broadcast %14 : f32 to vector<1x128xf32>
    %16 = arith.mulf %15, %0 : vector<1x128xf32>
    %17 = arith.addf %13, %16 : vector<1x128xf32>
    %c1_8 = arith.constant 1 : index
    %18 = memref.load %arg1[%c1_8] : memref<20xf32, #tpu.memory_space<smem>>
    %19 = vector.broadcast %18 : f32 to vector<1x128xf32>
    %20 = arith.mulf %19, %1 : vector<1x128xf32>
    %21 = arith.addf %17, %20 : vector<1x128xf32>
    %cst_9 = arith.constant 0.000000e+00 : f32
    %22 = vector.broadcast %cst_9 : f32 to vector<1x128xf32>
    %23 = arith.maximumf %21, %22 : vector<1x128xf32>
    %c0_10 = arith.constant 0 : index
    %24 = memref.load %arg3[%c0_10] : memref<20xf32, #tpu.memory_space<smem>>
    %25 = vector.broadcast %24 : f32 to vector<1x128xf32>
    %26 = arith.mulf %25, %23 : vector<1x128xf32>
    %27 = arith.addf %5, %26 : vector<1x128xf32>
    %c10 = arith.constant 10 : index
    %28 = memref.load %arg3[%c10] : memref<20xf32, #tpu.memory_space<smem>>
    %29 = vector.broadcast %28 : f32 to vector<1x128xf32>
    %30 = arith.mulf %29, %23 : vector<1x128xf32>
    %31 = arith.addf %9, %30 : vector<1x128xf32>
    %c1_11 = arith.constant 1 : index
    %32 = memref.load %arg2[%c1_11] : memref<10xf32, #tpu.memory_space<smem>>
    %cst_12 = arith.constant 0.000000e+00 : f32
    %33 = vector.broadcast %cst_12 : f32 to vector<1x128xf32>
    %34 = vector.broadcast %32 : f32 to vector<1x128xf32>
    %35 = arith.addf %34, %33 : vector<1x128xf32>
    %c2 = arith.constant 2 : index
    %36 = memref.load %arg1[%c2] : memref<20xf32, #tpu.memory_space<smem>>
    %37 = vector.broadcast %36 : f32 to vector<1x128xf32>
    %38 = arith.mulf %37, %0 : vector<1x128xf32>
    %39 = arith.addf %35, %38 : vector<1x128xf32>
    %c3 = arith.constant 3 : index
    %40 = memref.load %arg1[%c3] : memref<20xf32, #tpu.memory_space<smem>>
    %41 = vector.broadcast %40 : f32 to vector<1x128xf32>
    %42 = arith.mulf %41, %1 : vector<1x128xf32>
    %43 = arith.addf %39, %42 : vector<1x128xf32>
    %cst_13 = arith.constant 0.000000e+00 : f32
    %44 = vector.broadcast %cst_13 : f32 to vector<1x128xf32>
    %45 = arith.maximumf %43, %44 : vector<1x128xf32>
    %c1_14 = arith.constant 1 : index
    %46 = memref.load %arg3[%c1_14] : memref<20xf32, #tpu.memory_space<smem>>
    %47 = vector.broadcast %46 : f32 to vector<1x128xf32>
    %48 = arith.mulf %47, %45 : vector<1x128xf32>
    %49 = arith.addf %27, %48 : vector<1x128xf32>
    %c11 = arith.constant 11 : index
    %50 = memref.load %arg3[%c11] : memref<20xf32, #tpu.memory_space<smem>>
    %51 = vector.broadcast %50 : f32 to vector<1x128xf32>
    %52 = arith.mulf %51, %45 : vector<1x128xf32>
    %53 = arith.addf %31, %52 : vector<1x128xf32>
    %c2_15 = arith.constant 2 : index
    %54 = memref.load %arg2[%c2_15] : memref<10xf32, #tpu.memory_space<smem>>
    %cst_16 = arith.constant 0.000000e+00 : f32
    %55 = vector.broadcast %cst_16 : f32 to vector<1x128xf32>
    %56 = vector.broadcast %54 : f32 to vector<1x128xf32>
    %57 = arith.addf %56, %55 : vector<1x128xf32>
    %c4 = arith.constant 4 : index
    %58 = memref.load %arg1[%c4] : memref<20xf32, #tpu.memory_space<smem>>
    %59 = vector.broadcast %58 : f32 to vector<1x128xf32>
    %60 = arith.mulf %59, %0 : vector<1x128xf32>
    %61 = arith.addf %57, %60 : vector<1x128xf32>
    %c5 = arith.constant 5 : index
    %62 = memref.load %arg1[%c5] : memref<20xf32, #tpu.memory_space<smem>>
    %63 = vector.broadcast %62 : f32 to vector<1x128xf32>
    %64 = arith.mulf %63, %1 : vector<1x128xf32>
    %65 = arith.addf %61, %64 : vector<1x128xf32>
    %cst_17 = arith.constant 0.000000e+00 : f32
    %66 = vector.broadcast %cst_17 : f32 to vector<1x128xf32>
    %67 = arith.maximumf %65, %66 : vector<1x128xf32>
    %c2_18 = arith.constant 2 : index
    %68 = memref.load %arg3[%c2_18] : memref<20xf32, #tpu.memory_space<smem>>
    %69 = vector.broadcast %68 : f32 to vector<1x128xf32>
    %70 = arith.mulf %69, %67 : vector<1x128xf32>
    %71 = arith.addf %49, %70 : vector<1x128xf32>
    %c12 = arith.constant 12 : index
    %72 = memref.load %arg3[%c12] : memref<20xf32, #tpu.memory_space<smem>>
    %73 = vector.broadcast %72 : f32 to vector<1x128xf32>
    %74 = arith.mulf %73, %67 : vector<1x128xf32>
    %75 = arith.addf %53, %74 : vector<1x128xf32>
    %c3_19 = arith.constant 3 : index
    %76 = memref.load %arg2[%c3_19] : memref<10xf32, #tpu.memory_space<smem>>
    %cst_20 = arith.constant 0.000000e+00 : f32
    %77 = vector.broadcast %cst_20 : f32 to vector<1x128xf32>
    %78 = vector.broadcast %76 : f32 to vector<1x128xf32>
    %79 = arith.addf %78, %77 : vector<1x128xf32>
    %c6 = arith.constant 6 : index
    %80 = memref.load %arg1[%c6] : memref<20xf32, #tpu.memory_space<smem>>
    %81 = vector.broadcast %80 : f32 to vector<1x128xf32>
    %82 = arith.mulf %81, %0 : vector<1x128xf32>
    %83 = arith.addf %79, %82 : vector<1x128xf32>
    %c7 = arith.constant 7 : index
    %84 = memref.load %arg1[%c7] : memref<20xf32, #tpu.memory_space<smem>>
    %85 = vector.broadcast %84 : f32 to vector<1x128xf32>
    %86 = arith.mulf %85, %1 : vector<1x128xf32>
    %87 = arith.addf %83, %86 : vector<1x128xf32>
    %cst_21 = arith.constant 0.000000e+00 : f32
    %88 = vector.broadcast %cst_21 : f32 to vector<1x128xf32>
    %89 = arith.maximumf %87, %88 : vector<1x128xf32>
    %c3_22 = arith.constant 3 : index
    %90 = memref.load %arg3[%c3_22] : memref<20xf32, #tpu.memory_space<smem>>
    %91 = vector.broadcast %90 : f32 to vector<1x128xf32>
    %92 = arith.mulf %91, %89 : vector<1x128xf32>
    %93 = arith.addf %71, %92 : vector<1x128xf32>
    %c13 = arith.constant 13 : index
    %94 = memref.load %arg3[%c13] : memref<20xf32, #tpu.memory_space<smem>>
    %95 = vector.broadcast %94 : f32 to vector<1x128xf32>
    %96 = arith.mulf %95, %89 : vector<1x128xf32>
    %97 = arith.addf %75, %96 : vector<1x128xf32>
    %c4_23 = arith.constant 4 : index
    %98 = memref.load %arg2[%c4_23] : memref<10xf32, #tpu.memory_space<smem>>
    %cst_24 = arith.constant 0.000000e+00 : f32
    %99 = vector.broadcast %cst_24 : f32 to vector<1x128xf32>
    %100 = vector.broadcast %98 : f32 to vector<1x128xf32>
    %101 = arith.addf %100, %99 : vector<1x128xf32>
    %c8 = arith.constant 8 : index
    %102 = memref.load %arg1[%c8] : memref<20xf32, #tpu.memory_space<smem>>
    %103 = vector.broadcast %102 : f32 to vector<1x128xf32>
    %104 = arith.mulf %103, %0 : vector<1x128xf32>
    %105 = arith.addf %101, %104 : vector<1x128xf32>
    %c9 = arith.constant 9 : index
    %106 = memref.load %arg1[%c9] : memref<20xf32, #tpu.memory_space<smem>>
    %107 = vector.broadcast %106 : f32 to vector<1x128xf32>
    %108 = arith.mulf %107, %1 : vector<1x128xf32>
    %109 = arith.addf %105, %108 : vector<1x128xf32>
    %cst_25 = arith.constant 0.000000e+00 : f32
    %110 = vector.broadcast %cst_25 : f32 to vector<1x128xf32>
    %111 = arith.maximumf %109, %110 : vector<1x128xf32>
    %c4_26 = arith.constant 4 : index
    %112 = memref.load %arg3[%c4_26] : memref<20xf32, #tpu.memory_space<smem>>
    %113 = vector.broadcast %112 : f32 to vector<1x128xf32>
    %114 = arith.mulf %113, %111 : vector<1x128xf32>
    %115 = arith.addf %93, %114 : vector<1x128xf32>
    %c14 = arith.constant 14 : index
    %116 = memref.load %arg3[%c14] : memref<20xf32, #tpu.memory_space<smem>>
    %117 = vector.broadcast %116 : f32 to vector<1x128xf32>
    %118 = arith.mulf %117, %111 : vector<1x128xf32>
    %119 = arith.addf %97, %118 : vector<1x128xf32>
    %c5_27 = arith.constant 5 : index
    %120 = memref.load %arg2[%c5_27] : memref<10xf32, #tpu.memory_space<smem>>
    %cst_28 = arith.constant 0.000000e+00 : f32
    %121 = vector.broadcast %cst_28 : f32 to vector<1x128xf32>
    %122 = vector.broadcast %120 : f32 to vector<1x128xf32>
    %123 = arith.addf %122, %121 : vector<1x128xf32>
    %c10_29 = arith.constant 10 : index
    %124 = memref.load %arg1[%c10_29] : memref<20xf32, #tpu.memory_space<smem>>
    %125 = vector.broadcast %124 : f32 to vector<1x128xf32>
    %126 = arith.mulf %125, %0 : vector<1x128xf32>
    %127 = arith.addf %123, %126 : vector<1x128xf32>
    %c11_30 = arith.constant 11 : index
    %128 = memref.load %arg1[%c11_30] : memref<20xf32, #tpu.memory_space<smem>>
    %129 = vector.broadcast %128 : f32 to vector<1x128xf32>
    %130 = arith.mulf %129, %1 : vector<1x128xf32>
    %131 = arith.addf %127, %130 : vector<1x128xf32>
    %cst_31 = arith.constant 0.000000e+00 : f32
    %132 = vector.broadcast %cst_31 : f32 to vector<1x128xf32>
    %133 = arith.maximumf %131, %132 : vector<1x128xf32>
    %c5_32 = arith.constant 5 : index
    %134 = memref.load %arg3[%c5_32] : memref<20xf32, #tpu.memory_space<smem>>
    %135 = vector.broadcast %134 : f32 to vector<1x128xf32>
    %136 = arith.mulf %135, %133 : vector<1x128xf32>
    %137 = arith.addf %115, %136 : vector<1x128xf32>
    %c15 = arith.constant 15 : index
    %138 = memref.load %arg3[%c15] : memref<20xf32, #tpu.memory_space<smem>>
    %139 = vector.broadcast %138 : f32 to vector<1x128xf32>
    %140 = arith.mulf %139, %133 : vector<1x128xf32>
    %141 = arith.addf %119, %140 : vector<1x128xf32>
    %c6_33 = arith.constant 6 : index
    %142 = memref.load %arg2[%c6_33] : memref<10xf32, #tpu.memory_space<smem>>
    %cst_34 = arith.constant 0.000000e+00 : f32
    %143 = vector.broadcast %cst_34 : f32 to vector<1x128xf32>
    %144 = vector.broadcast %142 : f32 to vector<1x128xf32>
    %145 = arith.addf %144, %143 : vector<1x128xf32>
    %c12_35 = arith.constant 12 : index
    %146 = memref.load %arg1[%c12_35] : memref<20xf32, #tpu.memory_space<smem>>
    %147 = vector.broadcast %146 : f32 to vector<1x128xf32>
    %148 = arith.mulf %147, %0 : vector<1x128xf32>
    %149 = arith.addf %145, %148 : vector<1x128xf32>
    %c13_36 = arith.constant 13 : index
    %150 = memref.load %arg1[%c13_36] : memref<20xf32, #tpu.memory_space<smem>>
    %151 = vector.broadcast %150 : f32 to vector<1x128xf32>
    %152 = arith.mulf %151, %1 : vector<1x128xf32>
    %153 = arith.addf %149, %152 : vector<1x128xf32>
    %cst_37 = arith.constant 0.000000e+00 : f32
    %154 = vector.broadcast %cst_37 : f32 to vector<1x128xf32>
    %155 = arith.maximumf %153, %154 : vector<1x128xf32>
    %c6_38 = arith.constant 6 : index
    %156 = memref.load %arg3[%c6_38] : memref<20xf32, #tpu.memory_space<smem>>
    %157 = vector.broadcast %156 : f32 to vector<1x128xf32>
    %158 = arith.mulf %157, %155 : vector<1x128xf32>
    %159 = arith.addf %137, %158 : vector<1x128xf32>
    %c16 = arith.constant 16 : index
    %160 = memref.load %arg3[%c16] : memref<20xf32, #tpu.memory_space<smem>>
    %161 = vector.broadcast %160 : f32 to vector<1x128xf32>
    %162 = arith.mulf %161, %155 : vector<1x128xf32>
    %163 = arith.addf %141, %162 : vector<1x128xf32>
    %c7_39 = arith.constant 7 : index
    %164 = memref.load %arg2[%c7_39] : memref<10xf32, #tpu.memory_space<smem>>
    %cst_40 = arith.constant 0.000000e+00 : f32
    %165 = vector.broadcast %cst_40 : f32 to vector<1x128xf32>
    %166 = vector.broadcast %164 : f32 to vector<1x128xf32>
    %167 = arith.addf %166, %165 : vector<1x128xf32>
    %c14_41 = arith.constant 14 : index
    %168 = memref.load %arg1[%c14_41] : memref<20xf32, #tpu.memory_space<smem>>
    %169 = vector.broadcast %168 : f32 to vector<1x128xf32>
    %170 = arith.mulf %169, %0 : vector<1x128xf32>
    %171 = arith.addf %167, %170 : vector<1x128xf32>
    %c15_42 = arith.constant 15 : index
    %172 = memref.load %arg1[%c15_42] : memref<20xf32, #tpu.memory_space<smem>>
    %173 = vector.broadcast %172 : f32 to vector<1x128xf32>
    %174 = arith.mulf %173, %1 : vector<1x128xf32>
    %175 = arith.addf %171, %174 : vector<1x128xf32>
    %cst_43 = arith.constant 0.000000e+00 : f32
    %176 = vector.broadcast %cst_43 : f32 to vector<1x128xf32>
    %177 = arith.maximumf %175, %176 : vector<1x128xf32>
    %c7_44 = arith.constant 7 : index
    %178 = memref.load %arg3[%c7_44] : memref<20xf32, #tpu.memory_space<smem>>
    %179 = vector.broadcast %178 : f32 to vector<1x128xf32>
    %180 = arith.mulf %179, %177 : vector<1x128xf32>
    %181 = arith.addf %159, %180 : vector<1x128xf32>
    %c17 = arith.constant 17 : index
    %182 = memref.load %arg3[%c17] : memref<20xf32, #tpu.memory_space<smem>>
    %183 = vector.broadcast %182 : f32 to vector<1x128xf32>
    %184 = arith.mulf %183, %177 : vector<1x128xf32>
    %185 = arith.addf %163, %184 : vector<1x128xf32>
    %c8_45 = arith.constant 8 : index
    %186 = memref.load %arg2[%c8_45] : memref<10xf32, #tpu.memory_space<smem>>
    %cst_46 = arith.constant 0.000000e+00 : f32
    %187 = vector.broadcast %cst_46 : f32 to vector<1x128xf32>
    %188 = vector.broadcast %186 : f32 to vector<1x128xf32>
    %189 = arith.addf %188, %187 : vector<1x128xf32>
    %c16_47 = arith.constant 16 : index
    %190 = memref.load %arg1[%c16_47] : memref<20xf32, #tpu.memory_space<smem>>
    %191 = vector.broadcast %190 : f32 to vector<1x128xf32>
    %192 = arith.mulf %191, %0 : vector<1x128xf32>
    %193 = arith.addf %189, %192 : vector<1x128xf32>
    %c17_48 = arith.constant 17 : index
    %194 = memref.load %arg1[%c17_48] : memref<20xf32, #tpu.memory_space<smem>>
    %195 = vector.broadcast %194 : f32 to vector<1x128xf32>
    %196 = arith.mulf %195, %1 : vector<1x128xf32>
    %197 = arith.addf %193, %196 : vector<1x128xf32>
    %cst_49 = arith.constant 0.000000e+00 : f32
    %198 = vector.broadcast %cst_49 : f32 to vector<1x128xf32>
    %199 = arith.maximumf %197, %198 : vector<1x128xf32>
    %c8_50 = arith.constant 8 : index
    %200 = memref.load %arg3[%c8_50] : memref<20xf32, #tpu.memory_space<smem>>
    %201 = vector.broadcast %200 : f32 to vector<1x128xf32>
    %202 = arith.mulf %201, %199 : vector<1x128xf32>
    %203 = arith.addf %181, %202 : vector<1x128xf32>
    %c18 = arith.constant 18 : index
    %204 = memref.load %arg3[%c18] : memref<20xf32, #tpu.memory_space<smem>>
    %205 = vector.broadcast %204 : f32 to vector<1x128xf32>
    %206 = arith.mulf %205, %199 : vector<1x128xf32>
    %207 = arith.addf %185, %206 : vector<1x128xf32>
    %c9_51 = arith.constant 9 : index
    %208 = memref.load %arg2[%c9_51] : memref<10xf32, #tpu.memory_space<smem>>
    %cst_52 = arith.constant 0.000000e+00 : f32
    %209 = vector.broadcast %cst_52 : f32 to vector<1x128xf32>
    %210 = vector.broadcast %208 : f32 to vector<1x128xf32>
    %211 = arith.addf %210, %209 : vector<1x128xf32>
    %c18_53 = arith.constant 18 : index
    %212 = memref.load %arg1[%c18_53] : memref<20xf32, #tpu.memory_space<smem>>
    %213 = vector.broadcast %212 : f32 to vector<1x128xf32>
    %214 = arith.mulf %213, %0 : vector<1x128xf32>
    %215 = arith.addf %211, %214 : vector<1x128xf32>
    %c19 = arith.constant 19 : index
    %216 = memref.load %arg1[%c19] : memref<20xf32, #tpu.memory_space<smem>>
    %217 = vector.broadcast %216 : f32 to vector<1x128xf32>
    %218 = arith.mulf %217, %1 : vector<1x128xf32>
    %219 = arith.addf %215, %218 : vector<1x128xf32>
    %cst_54 = arith.constant 0.000000e+00 : f32
    %220 = vector.broadcast %cst_54 : f32 to vector<1x128xf32>
    %221 = arith.maximumf %219, %220 : vector<1x128xf32>
    %c9_55 = arith.constant 9 : index
    %222 = memref.load %arg3[%c9_55] : memref<20xf32, #tpu.memory_space<smem>>
    %223 = vector.broadcast %222 : f32 to vector<1x128xf32>
    %224 = arith.mulf %223, %221 : vector<1x128xf32>
    %225 = arith.addf %203, %224 : vector<1x128xf32>
    %c19_56 = arith.constant 19 : index
    %226 = memref.load %arg3[%c19_56] : memref<20xf32, #tpu.memory_space<smem>>
    %227 = vector.broadcast %226 : f32 to vector<1x128xf32>
    %228 = arith.mulf %227, %221 : vector<1x128xf32>
    %229 = arith.addf %207, %228 : vector<1x128xf32>
    %c0_57 = arith.constant 0 : index
    %c0_58 = arith.constant 0 : index
    %230 = vector.load %arg6[%c0_57, %c0_58] : memref<2x128xf32, #tpu.memory_space<vmem>>, vector<1x128xf32>
    tpu.vector_store %arg6[%c0_57, %c0_58], %225 {strides = array<i32>} : memref<2x128xf32, #tpu.memory_space<vmem>>, vector<1x128xf32>,
    %c1_59 = arith.constant 1 : index
    %c0_60 = arith.constant 0 : index
    %231 = vector.load %arg6[%c1_59, %c0_60] : memref<2x128xf32, #tpu.memory_space<vmem>>, vector<1x128xf32>
    tpu.vector_store %arg6[%c1_59, %c0_60], %229 {strides = array<i32>} : memref<2x128xf32, #tpu.memory_space<vmem>>, vector<1x128xf32>,
    return
  }
  func.func @transform_0(%arg0: i32) -> i32 {
    %c0_i32 = arith.constant 0 : i32
    %c0_i32_0 = arith.constant 0 : i32
    return %c0_i32 : i32
  }
  func.func @transform_1(%arg0: i32) -> i32 {
    %c0_i32 = arith.constant 0 : i32
    %c0_i32_0 = arith.constant 0 : i32
    return %c0_i32 : i32
  }
  func.func @transform_2(%arg0: i32) -> i32 {
    %c0_i32 = arith.constant 0 : i32
    %c0_i32_0 = arith.constant 0 : i32
    return %c0_i32 : i32
  }
  func.func @transform_3(%arg0: i32) -> i32 {
    %c0_i32 = arith.constant 0 : i32
    %c0_i32_0 = arith.constant 0 : i32
    return %c0_i32 : i32
  }
  func.func @transform_4(%arg0: i32) -> (i32, i32) {
    %c0_i32 = arith.constant 0 : i32
    %c0_i32_0 = arith.constant 0 : i32
    return %c0_i32, %arg0 : i32, i32
  }
  func.func @transform_5(%arg0: i32) -> (i32, i32) {
    %c0_i32 = arith.constant 0 : i32
    %c0_i32_0 = arith.constant 0 : i32
    return %c0_i32, %arg0 : i32, i32
  }
}

</mosaic_0001>

<bundles_post_ra>
// kernel: tpu_custom_call.1
= control target key start
LH: loop header
LB: loop body
LE: loop exit
PB: predicated region body
PF: predicated region fallthrough
CT: control target
= control target key end

     0   :  { %10 = vsyncpa [#allocation4], 0  ;;  %s665_s0 = inlined_call_operand.hbm [shape: f32[20], index: 0, kind: input, shape index: {}]   ;;  %s666_s1 = inlined_call_operand.vmem [shape: f32[10], index: 1, kind: input, shape index: {}]   ;;  %s667_s2 = inlined_call_operand.vmem [shape: f32[20], index: 2, kind: input, shape index: {}]   ;;  %s668_s3 = inlined_call_operand.vmem [shape: f32[2], index: 3, kind: input, shape index: {}]   ;;  %s669_s4 = inlined_call_operand.vmem [shape: f32[2,128], index: 4, kind: input, shape index: {}]   ;;  %s670_s5 = inlined_call_operand.hbm [shape: f32[2,128], index: 5, kind: output, shape index: {}]  }
   0x1   :  { %11 = vsyncpa [#allocation5], 0 }
   0x2   :  { %12 = vsyncpa [#allocation8], 0  ;;  %s38_s20 = sshll.u32 %s667_s2, 4  ;;  %s39_s20 = int_to_ptr.vmem [resolvable:$true] %s38_s20 }
   0x3   :  { %13 = vsyncpa [#allocation3], 0  ;;  %s347_s21 = scalar_lea.vmem %s39_s20, 16  ;;  %p352_p1 = scmp.lt.s32.totalorder %s39_s20, %s39_s20 }
   0x4   :  { %p348_p0 = scmp.ne.s32.totalorder %s39_s20, %s347_s21  ;;  %p353_p2 = scmp.lt.s32.totalorder %s347_s21, %s347_s21 }
   0x6   :  { %p354_p3 = por %p353_p2, %p352_p1 }
   0x8   :  { %p355_p4 = pnand %p354_p3, %p348_p0 }
   0xa   :  { %358 = shalt.err (!%p355_p4)
}
   0xb   :  { %s423_s22 = smov [#allocation7]   ;;  %s359_s25 = scalar_lea.hbm %s665_s0, 16 }
   0xc   :  { %41 = dma.vmem_to_smem %s39_s20, 16, %s423_s22, [#allocation8]  }
   0xd   :  { %p360_p5 = scmp.ne.s32.totalorder %s665_s0, %s359_s25  ;;  %p363_p6 = scmp.lt.u32.totalorder %s359_s25, %s665_s0 }
   0xf   :  { %p365_p7 = pnand %p363_p6, %p360_p5 }
  0x11   :  { %368 = shalt.err (!%p365_p7)
}
  0x12   :  { %s424_s29 = smov [#allocation2]   ;;  %s28_s9 = sshll.u32 %s666_s1, 4  ;;  %s29_s9 = int_to_ptr.vmem [resolvable:$true] %s28_s9 }
  0x13   :  { %21 = dma.hbm_to_smem %s665_s0, 16, %s424_s29, [#allocation4]  }
  0x14   :  { %s48_s12 = sshll.u32 %s668_s3, 4  ;;  %s369_s13 = scalar_lea.vmem %s29_s9, 16  ;;  %s49_s12 = int_to_ptr.vmem [resolvable:$true] %s48_s12 }
  0x15   :  { %p370_p8 = scmp.ne.s32.totalorder %s29_s9, %s369_s13  ;;  %p374_p9 = scmp.lt.s32.totalorder %s29_s9, %s29_s9 }
  0x16   :  { %p375_p10 = scmp.lt.s32.totalorder %s369_s13, %s369_s13 }
  0x18   :  { %p376_p11 = por %p375_p10, %p374_p9 }
  0x1a   :  { %p377_p12 = pnand %p376_p11, %p370_p8 }
  0x1c   :  { %380 = shalt.err (!%p377_p12)
}
  0x1d   :  { %s425_s14 = smov [#allocation6]   ;;  %s381_s0 = scalar_lea.vmem %s49_s12, 16 }
  0x1e   :  { %31 = dma.vmem_to_smem %s29_s9, 16, %s425_s14, [#allocation5]  }
  0x1f   :  { %p382_p13 = scmp.ne.s32.totalorder %s49_s12, %s381_s0  ;;  %p386_p0 = scmp.lt.s32.totalorder %s49_s12, %s49_s12 }
  0x20   :  { %p387_p1 = scmp.lt.s32.totalorder %s381_s0, %s381_s0 }
  0x22   :  { %p388_p2 = por %p387_p1, %p386_p0 }
  0x24   :  { %p389_p3 = pnand %p388_p2, %p382_p13 }
  0x26   :  { %392 = shalt.err (!%p389_p3)
}
  0x27   :  { %s426_s1 = smov [#allocation9]  }
  0x28   :  { %51 = dma.vmem_to_smem %s49_s12, 16, %s426_s1, [#allocation8]  }
  0x29   :  { %415 = dma.done.wait [#allocation4], 16  }
  0x2a   :  { %416 = vsyncadd [#allocation4], 4294967280 }
  0x2b   :  { %417 = dma.done.wait [#allocation5], 16  }
  0x2c   :  { %418 = vsyncadd [#allocation5], 4294967280 }
  0x2d   :  { %419 = dma.done.wait [#allocation8], 32  }
  0x2e   :  { %420 = vsyncadd [#allocation8], 4294967264 }
  0x2f   :  { %66 = sfence }
  0x30   :  { %s479_s3 = sld [smem:[#allocation9]]  ;;  %s481_s15 = sld [smem:[#allocation9 + $0x1]]  ;;  %v494_v0 = vld [vmem:[%s669_s4] sm:$0x1]  ;;  %v501_v1 = vld [vmem:[%s669_s4 + $0x1] sm:$0x1] }
  0x31   :  { %s483_s16 = sld [smem:[#allocation6]]  ;;  %s295_s18 = sld [smem:[#allocation2 + $0x1]] }
  0x32   :  { %s78_s17 = sld [smem:[#allocation2]]  ;;  %s487_s20 = sld [smem:[#allocation7 + $0xa]] }
  0x33   :  { %s485_s19 = sld [smem:[#allocation7]]  ;;  %s489_s21 = sld [smem:[#allocation6 + $0x1]] }
  0x34   :  { %s298_s22 = sld [smem:[#allocation2 + $0x2]]  ;;  %s299_s25 = sld [smem:[#allocation2 + $0x3]] }
  0x35   :  { %s496_s26 = sld [smem:[#allocation7 + $0x1]]  ;;  %s503_s28 = sld [smem:[#allocation7 + $0xb]] }
  0x36   :  { %s505_s29 = sld [smem:[#allocation6 + $0x2]]  ;;  %s507_s30 = sld [smem:[#allocation2 + $0x4]]  ;;  %v70_v5 = vstv %s479_s3  ;;  %v73_v8 = vstv %s481_s15 }
  0x37   :  { %s509_s6 = sld [smem:[#allocation2 + $0x5]]  ;;  %v76_v2 = vstv %s483_s16  ;;  %v83_v4 = vstv %s295_s18  ;;  %s512_s7 = sld [smem:[#allocation7 + $0x2]] }
  0x38   :  { %v79_v3 = vstv %s78_s17  ;;  %s514_s8 = sld [smem:[#allocation7 + $0xc]]  ;;  %v84_v7 = vmul.f32 %v83_v4, %v501_v1  ;;  %s519_s4 = sld [smem:[#allocation6 + $0x3]]  ;;  %v92_v13 = vstv %s487_s20 }
  0x39   :  { %v80_v6 = vmul.f32 %v79_v3, %v494_v0  ;;  %s521_s9 = sld [smem:[#allocation2 + $0x6]]  ;;  %v88_v9 = vstv %s485_s19  ;;  %v96_v10 = vstv %s489_s21  ;;  %s526_s10 = sld [smem:[#allocation2 + $0x7]] }
  0x3a   :  { %v99_v11 = vstv %s298_s22  ;;  %s528_s11 = sld [smem:[#allocation7 + $0x3]]  ;;  %v103_v15 = vstv %s299_s25  ;;  %s532_s12 = sld [smem:[#allocation7 + $0xd]] }
  0x3b   :  { %v81_v12 = vadd.f32 %v80_v6, %v76_v2  ;;  %v100_v14 = vmul.f32 %v99_v11, %v494_v0  ;;  %s534_s13 = sld [smem:[#allocation6 + $0x4]]  ;;  %v104_v16 = vmul.f32 %v103_v15, %v501_v1  ;;  %v108_v17 = vstv %s496_s26  ;;  %s540_s14 = sld [smem:[#allocation2 + $0x8]] }
  0x3c   :  { %v112_v18 = vstv %s503_s28  ;;  %v116_v19 = vstv %s505_s29  ;;  %s542_s0 = sld [smem:[#allocation2 + $0x9]]  ;;  %v119_v22 = vstv %s507_s30  ;;  %s552_s1 = sld [smem:[#allocation6 + $0x5]] }
  0x3d   :  { %v85_v20 = vadd.f32 %v84_v7, %v81_v12  ;;  %v101_v21 = vadd.f32 %v100_v14, %v96_v10  ;;  %v123_v23 = vstv %s509_s6  ;;  %v120_v24 = vmul.f32 %v119_v22, %v494_v0  ;;  %s554_s3 = sld [smem:[#allocation2 + $0xa]]  ;;  %s560_s15 = sld [smem:[#allocation7 + $0x4]] }
  0x3e   :  { %v124_v25 = vmul.f32 %v123_v23, %v501_v1  ;;  %v128_v26 = vstv %s512_s7  ;;  %v132_v27 = vstv %s514_s8  ;;  %v136_v30 = vstv %s519_s4  ;;  %s562_s16 = sld [smem:[#allocation2 + $0xb]]  ;;  %s566_s17 = sld [smem:[#allocation7 + $0xe]] }
  0x3f   :  { %v86_v28 = vmax.f32 %v85_v20, 0.0  ;;  %v105_v29 = vadd.f32 %v104_v16, %v101_v21  ;;  %v139_v31 = vstv %s521_s9  ;;  %v121_v32 = vadd.f32 %v120_v24, %v116_v19  ;;  %s568_s18 = sld [smem:[#allocation7 + $0x5]]  ;;  %s570_s19 = sld [smem:[#allocation6 + $0x6]] }
  0x40   :  { %v140_v33 = vmul.f32 %v139_v31, %v494_v0  ;;  %v143_v34 = vstv %s526_s10  ;;  %v148_v35 = vstv %s528_s11  ;;  %v152_v42 = vstv %s532_s12  ;;  %s572_s20 = sld [smem:[#allocation2 + $0xc]]  ;;  %s576_s21 = sld [smem:[#allocation7 + $0xf]] }
  0x41   :  { %v89_v36 = vmul.f32 %v88_v9, %v86_v28  ;;  %v93_v37 = vmul.f32 %v92_v13, %v86_v28  ;;  %v106_v38 = vmax.f32 %v105_v29, 0.0  ;;  %v144_v39 = vmul.f32 %v143_v34, %v501_v1  ;;  %s578_s22 = sld [smem:[#allocation2 + $0xd]]  ;;  %s582_s23 = sld [smem:[#allocation6 + $0x7]] }
  0x42   :  { %v125_v40 = vadd.f32 %v124_v25, %v121_v32  ;;  %v141_v41 = vadd.f32 %v140_v33, %v136_v30  ;;  %v156_v43 = vstv %s534_s13  ;;  %v159_v50 = vstv %s540_s14  ;;  %s584_s24 = sld [smem:[#allocation2 + $0xe]]  ;;  %s586_s25 = sld [smem:[#allocation2 + $0xf]] }
  0x43   :  { %v90_v44 = vadd.f32 %v89_v36, %v70_v5  ;;  %v94_v45 = vadd.f32 %v93_v37, %v73_v8  ;;  %v109_v46 = vmul.f32 %v108_v17, %v106_v38  ;;  %v113_v47 = vmul.f32 %v112_v18, %v106_v38  ;;  %s590_s26 = sld [smem:[#allocation7 + $0x6]]  ;;  %s592_s27 = sld [smem:[#allocation7 + $0x10]] }
  0x44   :  { %v126_v48 = vmax.f32 %v125_v40, 0.0  ;;  %v145_v49 = vadd.f32 %v144_v39, %v141_v41  ;;  %v163_v51 = vstv %s542_s0  ;;  %v160_v54 = vmul.f32 %v159_v50, %v494_v0  ;;  %s597_s2 = sld [smem:[#allocation7 + $0x7]]  ;;  %s599_s28 = sld [smem:[#allocation6 + $0x8]] }
  0x45   :  { %v110_v52 = vadd.f32 %v109_v46, %v90_v44  ;;  %v114_v53 = vadd.f32 %v113_v47, %v94_v45  ;;  %v164_v55 = vmul.f32 %v163_v51, %v501_v1  ;;  %v176_v60 = vstv %s552_s1  ;;  %s603_s29 = sld [smem:[#allocation2 + $0x10]]  ;;  %s605_s30 = sld [smem:[#allocation2 + $0x11]] }
  0x46   :  { %v129_v56 = vmul.f32 %v128_v26, %v126_v48  ;;  %v133_v57 = vmul.f32 %v132_v27, %v126_v48  ;;  %v146_v58 = vmax.f32 %v145_v49, 0.0  ;;  %v161_v59 = vadd.f32 %v160_v54, %v156_v43  ;;  %s613_s6 = sld [smem:[#allocation7 + $0x11]]  ;;  %s618_s8 = sld [smem:[#allocation2 + $0x12]] }
  0x47   :  { %v179_v61 = vstv %s554_s3  ;;  %v168_v5 = vstv %s560_s15  ;;  %v183_v7 = vstv %s562_s16  ;;  %v172_v10 = vstv %s566_s17  ;;  %s616_s7 = sld [smem:[#allocation6 + $0x9]]  ;;  %s623_s4 = sld [smem:[#allocation2 + $0x13]] }
  0x48   :  { %v130_v62 = vadd.f32 %v129_v56, %v110_v52  ;;  %v134_v63 = vadd.f32 %v133_v57, %v114_v53  ;;  %v149_v2 = vmul.f32 %v148_v35, %v146_v58  ;;  %v153_v3 = vmul.f32 %v152_v42, %v146_v58  ;;  %s629_s9 = sld [smem:[#allocation7 + $0x8]]  ;;  %s631_s10 = sld [smem:[#allocation7 + $0x12]] }
  0x49   :  { %v165_v4 = vadd.f32 %v164_v55, %v161_v59  ;;  %v180_v6 = vmul.f32 %v179_v61, %v494_v0  ;;  %v184_v11 = vmul.f32 %v183_v7, %v501_v1  ;;  %v196_v14 = vstv %s570_s19  ;;  %s638_s11 = sld [smem:[#allocation7 + $0x9]]  ;;  %s640_s12 = sld [smem:[#allocation7 + $0x13]] }
  0x4a   :  { %v150_v8 = vadd.f32 %v149_v2, %v130_v62  ;;  %v154_v9 = vadd.f32 %v153_v3, %v134_v63  ;;  %v199_v15 = vstv %s572_s20  ;;  %v188_v16 = vstv %s568_s18  ;;  %s427_s13 = smov [#allocation10]  }
  0x4b   :  { %v166_v12 = vmax.f32 %v165_v4, 0.0  ;;  %v181_v13 = vadd.f32 %v180_v6, %v176_v60  ;;  %v192_v17 = vstv %s576_s21  ;;  %v200_v18 = vmul.f32 %v199_v15, %v494_v0  ;;  %s283_s14 = sshll.u32 %s427_s13, 4  ;;  %s284_s14 = int_to_ptr.vmem [resolvable:$true] %s283_s14 }
  0x4c   :  { %v203_v19 = vstv %s578_s22  ;;  %v216_v25 = vstv %s582_s23  ;;  %v219_v26 = vstv %s584_s24  ;;  %v223_v27 = vstv %s586_s25  ;;  %s393_s0 = scalar_lea.vmem %s284_s14, 32  ;;  %p398_p5 = scmp.lt.s32.totalorder %s284_s14, %s284_s14 }
  0x4d   :  { %v169_v20 = vmul.f32 %v168_v5, %v166_v12  ;;  %v173_v21 = vmul.f32 %v172_v10, %v166_v12  ;;  %v185_v22 = vadd.f32 %v184_v11, %v181_v13  ;;  %v204_v23 = vmul.f32 %v203_v19, %v501_v1  ;;  %p394_p4 = scmp.ne.s32.totalorder %s284_s14, %s393_s0  ;;  %p399_p6 = scmp.lt.s32.totalorder %s393_s0, %s393_s0 }
  0x4e   :  { %v201_v24 = vadd.f32 %v200_v18, %v196_v14  ;;  %v220_v31 = vmul.f32 %v219_v26, %v494_v0  ;;  %v208_v33 = vstv %s590_s26  ;;  %v212_v34 = vstv %s592_s27 }
  0x4f   :  { %v170_v28 = vadd.f32 %v169_v20, %v150_v8  ;;  %v174_v29 = vadd.f32 %v173_v21, %v154_v9  ;;  %v186_v30 = vmax.f32 %v185_v22, 0.0  ;;  %v224_v35 = vmul.f32 %v223_v27, %v501_v1  ;;  %p400_p7 = por %p399_p6, %p398_p5 }
  0x50   :  { %v205_v32 = vadd.f32 %v204_v23, %v201_v24  ;;  %v221_v38 = vadd.f32 %v220_v31, %v216_v25  ;;  %v228_v39 = vstv %s597_s2  ;;  %v236_v41 = vstv %s599_s28 }
  0x51   :  { %v189_v36 = vmul.f32 %v188_v16, %v186_v30  ;;  %v193_v37 = vmul.f32 %v192_v17, %v186_v30  ;;  %v239_v42 = vstv %s603_s29  ;;  %v243_v43 = vstv %s605_s30  ;;  %p401_p8 = pnand %p400_p7, %p394_p4 }
  0x52   :  { %v206_v40 = vmax.f32 %v205_v32, 0.0  ;;  %v225_v46 = vadd.f32 %v224_v35, %v221_v38  ;;  %v240_v47 = vmul.f32 %v239_v42, %v494_v0  ;;  %v232_v50 = vstv %s613_s6 }
  0x53   :  { %v190_v44 = vadd.f32 %v189_v36, %v170_v28  ;;  %v194_v45 = vadd.f32 %v193_v37, %v174_v29  ;;  %v244_v51 = vmul.f32 %v243_v43, %v501_v1  ;;  %v256_v54 = vstv %s616_s7 }
  0x54   :  { %v209_v48 = vmul.f32 %v208_v33, %v206_v40  ;;  %v213_v49 = vmul.f32 %v212_v34, %v206_v40  ;;  %v226_v52 = vmax.f32 %v225_v46, 0.0  ;;  %v241_v53 = vadd.f32 %v240_v47, %v236_v41 }
  0x55   :  { %v259_v55 = vstv %s618_s8  ;;  %v263_v59 = vstv %s623_s4  ;;  %v248_v2 = vstv %s629_s9  ;;  %v252_v3 = vstv %s631_s10 }
  0x56   :  { %v210_v56 = vadd.f32 %v209_v48, %v190_v44  ;;  %v214_v57 = vadd.f32 %v213_v49, %v194_v45  ;;  %v260_v58 = vmul.f32 %v259_v55, %v494_v0  ;;  %v229_v60 = vmul.f32 %v228_v39, %v226_v52 }
  0x57   :  { %v233_v61 = vmul.f32 %v232_v50, %v226_v52  ;;  %v245_v62 = vadd.f32 %v244_v51, %v241_v53  ;;  %v264_v63 = vmul.f32 %v263_v59, %v501_v1  ;;  %v268_v11 = vstv %s638_s11 }
  0x58   :  { %v261_v4 = vadd.f32 %v260_v58, %v256_v54  ;;  %v230_v5 = vadd.f32 %v229_v60, %v210_v56  ;;  %v272_v12 = vstv %s640_s12 }
  0x59   :  { %v234_v6 = vadd.f32 %v233_v61, %v214_v57  ;;  %v246_v7 = vmax.f32 %v245_v62, 0.0 }
  0x5a   :  { %v265_v8 = vadd.f32 %v264_v63, %v261_v4 }
  0x5b   :  { %v249_v9 = vmul.f32 %v248_v2, %v246_v7  ;;  %v253_v10 = vmul.f32 %v252_v3, %v246_v7 }
  0x5c   :  { %v266_v13 = vmax.f32 %v265_v8, 0.0 }
  0x5d   :  { %v250_v0 = vadd.f32 %v249_v9, %v230_v5  ;;  %v254_v14 = vadd.f32 %v253_v10, %v234_v6 }
  0x5e   :  { %v269_v15 = vmul.f32 %v268_v11, %v266_v13  ;;  %v273_v16 = vmul.f32 %v272_v12, %v266_v13 }
  0x60   :  { %v270_v17 = vadd.f32 %v269_v15, %v250_v0  ;;  %v274_v1 = vadd.f32 %v273_v16, %v254_v14 }
  0x62   :  { %275 = vst [vmem:[#allocation10] sm:$0x1] %v270_v17  ;;  %276 = vst [vmem:[#allocation10 + $0x1] sm:$0x1] %v274_v1 }
  0x63   :  { %404 = shalt.err (!%p401_p8)
}
  0x64   :  { %s405_s15 = scalar_lea.hbm %s670_s5, 32 }
  0x65   :  { %p406_p9 = scmp.ne.s32.totalorder %s670_s5, %s405_s15  ;;  %p409_p10 = scmp.lt.u32.totalorder %s405_s15, %s670_s5 }
  0x67   :  { %p411_p11 = pnand %p409_p10, %p406_p9 }
  0x69   :  { %414 = shalt.err (!%p411_p11)
}
  0x6a   :  { %286 = dma.vmem_to_hbm [thread:$0]  %s284_s14, 32, %s670_s5, [#allocation3]  }
  0x6b   :  { %421 = dma.done.wait [#allocation3], 32  }
  0x6c   :  { %422 = vsyncadd [#allocation3], 4294967264 }
  0x6d   :  { %290 = vsyncpa [#allocation3], 1 }
  0x6e   :  { %291 = vsyncpa [#allocation4], 1 }
  0x6f   :  { %292 = vsyncpa [#allocation5], 1 }
  0x70   :  { %293 = vsyncpa [#allocation8], 1 }

</bundles_post_ra>
